<compile_context>
chip_gen: v7x
topology: tpu7x:2x2x1
jax: 0.10.0
libtpu: 0.0.40
codegen_flags: <defaults>
</compile_context>

<pallas_src>
import functools

import jax
import jax.numpy as jnp
from jax import lax
from jax.experimental import pallas as pl
from jax.experimental.pallas import tpu as pltpu


# ----------------------------------------------------------------------------
# Pallas kernel: fused multi-layer GRU + Linear head
# ----------------------------------------------------------------------------
def gru_rnn_kernel(x_ref, *refs, num_layers, hidden_size, batch, seq_len):
    """x_ref: [T*B, I] (row = t*B + b).

    refs layout:
      per layer l: w_ih [I_l, 3H], w_hh [H, 3H], b_ih [1, 3H], b_hh [1, 3H]
      then:        w_fc [H, O],    b_fc [1, O]
      then:        out_ref [T*B, O]
      scratch:     gx_ref [T*B, 3H], seq_ref [T*B, H], h_ref [B, H]
    """
    H, B, T = hidden_size, batch, seq_len
    n_w = 4 * num_layers + 2
    w_refs = refs[:n_w]
    out_ref = refs[n_w]
    gx_ref, seq_ref, h_ref = refs[n_w + 1:]

    cur = x_ref[...].astype(jnp.float32)                       # [T*B, I_0]

    for l in range(num_layers):
        w_ih = w_refs[4 * l][...]                              # [I_l, 3H]
        w_hh = w_refs[4 * l + 1][...]                          # [H, 3H]
        b_ih = w_refs[4 * l + 2][...]                          # [1, 3H]
        b_hh = w_refs[4 * l + 3][...]                          # [1, 3H]

        # One lane-dense MXU matmul for all timesteps, all batch rows and all
        # three gates at once; bias folded into the epilogue add.
        gx_ref[...] = (
            jnp.dot(cur, w_ih, preferred_element_type=jnp.float32) + b_ih
        )

        # h0 = 0 for every layer (matches the module's torch.zeros h0).
        h_ref[...] = jnp.zeros((B, H), jnp.float32)

        @pl.loop(0, T)
        def _(t):
            row = pl.multiple_of(t * B, B)                     # sublane-aligned
            h_prev = h_ref[...]                                # [B, H]
            gxt = gx_ref[pl.ds(row, B), :]                     # [B, 3H]
            gh = (
                jnp.dot(h_prev, w_hh, preferred_element_type=jnp.float32)
                + b_hh
            )                                                  # [B, 3H]
            r = jax.nn.sigmoid(gxt[:, :H] + gh[:, :H])
            z = jax.nn.sigmoid(gxt[:, H:2 * H] + gh[:, H:2 * H])
            n = jnp.tanh(gxt[:, 2 * H:] + r * gh[:, 2 * H:])
            h_new = (1.0 - z) * n + z * h_prev
            h_ref[...] = h_new
            seq_ref[pl.ds(row, B), :] = h_new

        cur = seq_ref[...]                                     # [T*B, H]

    # Final Linear head on the whole sequence in one matmul.
    w_fc = w_refs[4 * num_layers][...]                         # [H, O]
    b_fc = w_refs[4 * num_layers + 1][...]                     # [1, O]
    y = jnp.dot(cur, w_fc, preferred_element_type=jnp.float32) + b_fc
    out_ref[...] = y.astype(out_ref.dtype)


# ----------------------------------------------------------------------------
# Wrapper
# ----------------------------------------------------------------------------
def rnn_forward(x, params):
    """x: [B, T, input_size] (batch_first). Returns [B, T, output_size]."""
    B, T, I = x.shape
    layers = params["layers"]
    w_fc, b_fc = params["fc"]
    H = layers[0][1].shape[0]
    O = w_fc.shape[1]
    num_layers = len(layers)

    # Pure-JAX glue: time-major, batch folded into matmul rows (row = t*B + b).
    x_flat = jnp.transpose(x, (1, 0, 2)).reshape(T * B, I)

    flat_w = []
    for lp in layers:
        flat_w += list(lp)
    flat_w += [w_fc, b_fc]

    kernel = functools.partial(
        gru_rnn_kernel,
        num_layers=num_layers, hidden_size=H, batch=B, seq_len=T,
    )
    out_flat = pl.pallas_call(
        kernel,
        out_shape=jax.ShapeDtypeStruct((T * B, O), x.dtype),
        scratch_shapes=[
            pltpu.VMEM((T * B, 3 * H), jnp.float32),   # per-layer gate proj
            pltpu.VMEM((T * B, H), jnp.float32),       # layer output sequence
            pltpu.VMEM((B, H), jnp.float32),           # running hidden state
        ],
    )(x_flat, *flat_w)

    return jnp.transpose(out_flat.reshape(T, B, O), (1, 0, 2))


# ----------------------------------------------------------------------------
# Deterministic synthetic parameters (torch.nn.GRU / nn.Linear shapes, stored
# transposed so each projection is a plain [rows, in] @ [in, out] matmul).
# ----------------------------------------------------------------------------
def init_params(key, input_size, hidden_size, num_layers, output_size):
    def uni(k, shape, bound):
        return jax.random.uniform(k, shape, jnp.float32, -bound, bound)

    bound = 1.0 / hidden_size ** 0.5
    layers = []
    in_size = input_size
    for _ in range(num_layers):
        key, k1, k2, k3, k4 = jax.random.split(key, 5)
        w_ih = uni(k1, (in_size, 3 * hidden_size), bound)   # == W_ih_torch.T
        w_hh = uni(k2, (hidden_size, 3 * hidden_size), bound)
        b_ih = uni(k3, (1, 3 * hidden_size), bound)
        b_hh = uni(k4, (1, 3 * hidden_size), bound)
        layers.append((w_ih, w_hh, b_ih, b_hh))
        in_size = hidden_size
    key, k1, k2 = jax.random.split(key, 3)
    w_fc = uni(k1, (hidden_size, output_size), bound)       # == W_fc_torch.T
    b_fc = uni(k2, (1, output_size), bound)
    return {"layers": layers, "fc": (w_fc, b_fc)}


# ----------------------------------------------------------------------------
# Pure-JAX reference (torch.nn.GRU semantics, gate order r, z, n; h0 = 0)
# ----------------------------------------------------------------------------
def _ref_rnn(x, params):
    layers = params["layers"]
    w_fc, b_fc = params["fc"]
    H = layers[0][1].shape[0]
    cur = jnp.transpose(x, (1, 0, 2))                       # [T, B, I]
    for (w_ih, w_hh, b_ih, b_hh) in layers:
        def step(h, x_t, w_ih=w_ih, w_hh=w_hh, b_ih=b_ih, b_hh=b_hh):
            gx = x_t @ w_ih + b_ih
            gh = h @ w_hh + b_hh
            r = jax.nn.sigmoid(gx[:, :H] + gh[:, :H])
            z = jax.nn.sigmoid(gx[:, H:2 * H] + gh[:, H:2 * H])
            n = jnp.tanh(gx[:, 2 * H:] + r * gh[:, 2 * H:])
            h_new = (1.0 - z) * n + z * h
            return h_new, h_new
        h0 = jnp.zeros((cur.shape[1], H), jnp.float32)
        _, cur = lax.scan(step, h0, cur)
    y = cur @ w_fc + b_fc
    return jnp.transpose(y, (1, 0, 2))


# ----------------------------------------------------------------------------
if __name__ == "__main__":
    # batch=8 (sublane-aligned per-timestep row slices), seq=8, input=16,
    # hidden=32, num_layers=2, output=8 -- small shapes consistent with the
    # module's constructor arguments.
    B, T = 8, 8
    input_size, hidden_size, num_layers, output_size = 16, 32, 2, 8

    key = jax.random.PRNGKey(0)
    kx, kp = jax.random.split(key)
    x = jax.random.normal(kx, (B, T, input_size), jnp.float32)
    params = init_params(kp, input_size, hidden_size, num_layers, output_size)

    out = rnn_forward(x, params)
    out = jax.block_until_ready(out)

    ref = _ref_rnn(x, params)
    assert out.shape == (B, T, output_size), out.shape
    err = float(jnp.max(jnp.abs(out - ref)))
    assert err < 1e-4, err

    print("KERNEL_OK")
</pallas_src>

<mosaic_0001>
module attributes {stable_mosaic.version = 11 : i64} {
  func.func @gru_rnn_kernel(%arg0: memref<64x16xf32, #tpu.memory_space<vmem>>, %arg1: memref<16x96xf32, #tpu.memory_space<vmem>>, %arg2: memref<32x96xf32, #tpu.memory_space<vmem>>, %arg3: memref<1x96xf32, #tpu.memory_space<vmem>>, %arg4: memref<1x96xf32, #tpu.memory_space<vmem>>, %arg5: memref<32x96xf32, #tpu.memory_space<vmem>>, %arg6: memref<32x96xf32, #tpu.memory_space<vmem>>, %arg7: memref<1x96xf32, #tpu.memory_space<vmem>>, %arg8: memref<1x96xf32, #tpu.memory_space<vmem>>, %arg9: memref<32x8xf32, #tpu.memory_space<vmem>>, %arg10: memref<1x8xf32, #tpu.memory_space<vmem>>, %arg11: memref<64x8xf32, #tpu.memory_space<vmem>>, %arg12: memref<64x96xf32, #tpu.memory_space<vmem>>, %arg13: memref<64x32xf32, #tpu.memory_space<vmem>>, %arg14: memref<8x32xf32, #tpu.memory_space<vmem>>) attributes {dimension_semantics = [], scalar_prefetch = 0 : i64, scratch_operands = 3 : i64, tpu.core_type = #tpu.core_type<tc>} {
    %c0 = arith.constant 0 : index
    %c0_0 = arith.constant 0 : index
    %0 = vector.load %arg0[%c0, %c0_0] : memref<64x16xf32, #tpu.memory_space<vmem>>, vector<64x16xf32>
    %c0_1 = arith.constant 0 : index
    %c0_2 = arith.constant 0 : index
    %1 = vector.load %arg1[%c0_1, %c0_2] : memref<16x96xf32, #tpu.memory_space<vmem>>, vector<16x96xf32>
    %c0_3 = arith.constant 0 : index
    %c0_4 = arith.constant 0 : index
    %2 = vector.load %arg2[%c0_3, %c0_4] : memref<32x96xf32, #tpu.memory_space<vmem>>, vector<32x96xf32>
    %c0_5 = arith.constant 0 : index
    %c0_6 = arith.constant 0 : index
    %3 = vector.load %arg3[%c0_5, %c0_6] : memref<1x96xf32, #tpu.memory_space<vmem>>, vector<1x96xf32>
    %c0_7 = arith.constant 0 : index
    %c0_8 = arith.constant 0 : index
    %4 = vector.load %arg4[%c0_7, %c0_8] : memref<1x96xf32, #tpu.memory_space<vmem>>, vector<1x96xf32>
    %cst = arith.constant dense<0.000000e+00> : vector<64x96xf32>
    %5 = tpu.matmul %0, %1, %cst {dimension_numbers = #tpu.dot_dimension_numbers<[1], [0], [0], [1], [0, 0, 1, 1], [], []>} : vector<64x16xf32>, vector<16x96xf32>, vector<64x96xf32> -> vector<64x96xf32>
    %6 = vector.broadcast %3 : vector<1x96xf32> to vector<64x96xf32>
    %7 = arith.addf %5, %6 : vector<64x96xf32>
    %c0_9 = arith.constant 0 : index
    %c0_10 = arith.constant 0 : index
    %8 = vector.load %arg12[%c0_9, %c0_10] : memref<64x96xf32, #tpu.memory_space<vmem>>, vector<64x96xf32>
    tpu.vector_store %arg12[%c0_9, %c0_10], %7 {strides = array<i32>} : memref<64x96xf32, #tpu.memory_space<vmem>>, vector<64x96xf32>,
    %cst_11 = arith.constant 0.000000e+00 : f32
    %9 = vector.broadcast %cst_11 : f32 to vector<8x32xf32>
    %c0_12 = arith.constant 0 : index
    %c0_13 = arith.constant 0 : index
    %10 = vector.load %arg14[%c0_12, %c0_13] : memref<8x32xf32, #tpu.memory_space<vmem>>, vector<8x32xf32>
    tpu.vector_store %arg14[%c0_12, %c0_13], %9 {strides = array<i32>} : memref<8x32xf32, #tpu.memory_space<vmem>>, vector<8x32xf32>,
    %c0_i32 = arith.constant 0 : i32
    %c8_i32 = arith.constant 8 : i32
    %11 = arith.addi %c0_i32, %c8_i32 : i32
    %c1_i32 = arith.constant 1 : i32
    scf.for %arg15 = %c0_i32 to %11 step %c1_i32  : i32 {
      %c1_i32_44 = arith.constant 1 : i32
      %31 = arith.muli %arg15, %c1_i32_44 : i32
      %c0_i32_45 = arith.constant 0 : i32
      %32 = arith.addi %c0_i32_45, %31 : i32
      %c8_i32_46 = arith.constant 8 : i32
      %33 = arith.muli %32, %c8_i32_46 : i32
      %34 = tpu.assume_multiple %33, 8 : i32
      %c0_47 = arith.constant 0 : index
      %c0_48 = arith.constant 0 : index
      %35 = vector.load %arg14[%c0_47, %c0_48] : memref<8x32xf32, #tpu.memory_space<vmem>>, vector<8x32xf32>
      %36 = arith.index_cast %34 : i32 to index
      %c0_49 = arith.constant 0 : index
      %37 = vector.load %arg12[%36, %c0_49] : memref<64x96xf32, #tpu.memory_space<vmem>>, vector<8x96xf32>
      %cst_50 = arith.constant dense<0.000000e+00> : vector<8x96xf32>
      %38 = tpu.matmul %35, %2, %cst_50 {dimension_numbers = #tpu.dot_dimension_numbers<[1], [0], [0], [1], [0, 0, 1, 1], [], []>} : vector<8x32xf32>, vector<32x96xf32>, vector<8x96xf32> -> vector<8x96xf32>
      %39 = vector.broadcast %4 : vector<1x96xf32> to vector<8x96xf32>
      %40 = arith.addf %38, %39 : vector<8x96xf32>
      %41 = vector.extract_strided_slice %37 {offsets = [0, 0], sizes = [8, 32], strides = [1, 1]} : vector<8x96xf32> to vector<8x32xf32>
      %42 = vector.extract_strided_slice %40 {offsets = [0, 0], sizes = [8, 32], strides = [1, 1]} : vector<8x96xf32> to vector<8x32xf32>
      %43 = arith.addf %41, %42 : vector<8x32xf32>
      %44 = arith.negf %43 : vector<8x32xf32>
      %45 = math.exp %44 : vector<8x32xf32>
      %cst_51 = arith.constant 1.000000e+00 : f32
      %46 = vector.broadcast %cst_51 : f32 to vector<8x32xf32>
      %47 = arith.addf %46, %45 : vector<8x32xf32>
      %48 = arith.divf %46, %47 : vector<8x32xf32>
      %49 = vector.extract_strided_slice %37 {offsets = [0, 32], sizes = [8, 32], strides = [1, 1]} : vector<8x96xf32> to vector<8x32xf32>
      %50 = vector.extract_strided_slice %40 {offsets = [0, 32], sizes = [8, 32], strides = [1, 1]} : vector<8x96xf32> to vector<8x32xf32>
      %51 = arith.addf %49, %50 : vector<8x32xf32>
      %52 = arith.negf %51 : vector<8x32xf32>
      %53 = math.exp %52 : vector<8x32xf32>
      %cst_52 = arith.constant 1.000000e+00 : f32
      %54 = vector.broadcast %cst_52 : f32 to vector<8x32xf32>
      %55 = arith.addf %54, %53 : vector<8x32xf32>
      %56 = arith.divf %54, %55 : vector<8x32xf32>
      %57 = vector.extract_strided_slice %37 {offsets = [0, 64], sizes = [8, 32], strides = [1, 1]} : vector<8x96xf32> to vector<8x32xf32>
      %58 = vector.extract_strided_slice %40 {offsets = [0, 64], sizes = [8, 32], strides = [1, 1]} : vector<8x96xf32> to vector<8x32xf32>
      %59 = arith.mulf %48, %58 : vector<8x32xf32>
      %60 = arith.addf %57, %59 : vector<8x32xf32>
      %61 = math.tanh %60 : vector<8x32xf32>
      %cst_53 = arith.constant 1.000000e+00 : f32
      %62 = vector.broadcast %cst_53 : f32 to vector<8x32xf32>
      %63 = arith.subf %62, %56 : vector<8x32xf32>
      %64 = arith.mulf %63, %61 : vector<8x32xf32>
      %65 = arith.mulf %56, %35 : vector<8x32xf32>
      %66 = arith.addf %64, %65 : vector<8x32xf32>
      %c0_54 = arith.constant 0 : index
      %c0_55 = arith.constant 0 : index
      %67 = vector.load %arg14[%c0_54, %c0_55] : memref<8x32xf32, #tpu.memory_space<vmem>>, vector<8x32xf32>
      tpu.vector_store %arg14[%c0_54, %c0_55], %66 {strides = array<i32>} : memref<8x32xf32, #tpu.memory_space<vmem>>, vector<8x32xf32>,
      %68 = arith.index_cast %34 : i32 to index
      %c0_56 = arith.constant 0 : index
      %69 = vector.load %arg13[%68, %c0_56] : memref<64x32xf32, #tpu.memory_space<vmem>>, vector<8x32xf32>
      tpu.vector_store %arg13[%68, %c0_56], %66 {strides = array<i32>} : memref<64x32xf32, #tpu.memory_space<vmem>>, vector<8x32xf32>,
    }
    %c8_i32_14 = arith.constant 8 : i32
    %c0_15 = arith.constant 0 : index
    %c0_16 = arith.constant 0 : index
    %12 = vector.load %arg13[%c0_15, %c0_16] : memref<64x32xf32, #tpu.memory_space<vmem>>, vector<64x32xf32>
    %c0_17 = arith.constant 0 : index
    %c0_18 = arith.constant 0 : index
    %13 = vector.load %arg5[%c0_17, %c0_18] : memref<32x96xf32, #tpu.memory_space<vmem>>, vector<32x96xf32>
    %c0_19 = arith.constant 0 : index
    %c0_20 = arith.constant 0 : index
    %14 = vector.load %arg6[%c0_19, %c0_20] : memref<32x96xf32, #tpu.memory_space<vmem>>, vector<32x96xf32>
    %c0_21 = arith.constant 0 : index
    %c0_22 = arith.constant 0 : index
    %15 = vector.load %arg7[%c0_21, %c0_22] : memref<1x96xf32, #tpu.memory_space<vmem>>, vector<1x96xf32>
    %c0_23 = arith.constant 0 : index
    %c0_24 = arith.constant 0 : index
    %16 = vector.load %arg8[%c0_23, %c0_24] : memref<1x96xf32, #tpu.memory_space<vmem>>, vector<1x96xf32>
    %cst_25 = arith.constant dense<0.000000e+00> : vector<64x96xf32>
    %17 = tpu.matmul %12, %13, %cst_25 {dimension_numbers = #tpu.dot_dimension_numbers<[1], [0], [0], [1], [0, 0, 1, 1], [], []>} : vector<64x32xf32>, vector<32x96xf32>, vector<64x96xf32> -> vector<64x96xf32>
    %18 = vector.broadcast %15 : vector<1x96xf32> to vector<64x96xf32>
    %19 = arith.addf %17, %18 : vector<64x96xf32>
    %c0_26 = arith.constant 0 : index
    %c0_27 = arith.constant 0 : index
    %20 = vector.load %arg12[%c0_26, %c0_27] : memref<64x96xf32, #tpu.memory_space<vmem>>, vector<64x96xf32>
    tpu.vector_store %arg12[%c0_26, %c0_27], %19 {strides = array<i32>} : memref<64x96xf32, #tpu.memory_space<vmem>>, vector<64x96xf32>,
    %cst_28 = arith.constant 0.000000e+00 : f32
    %21 = vector.broadcast %cst_28 : f32 to vector<8x32xf32>
    %c0_29 = arith.constant 0 : index
    %c0_30 = arith.constant 0 : index
    %22 = vector.load %arg14[%c0_29, %c0_30] : memref<8x32xf32, #tpu.memory_space<vmem>>, vector<8x32xf32>
    tpu.vector_store %arg14[%c0_29, %c0_30], %21 {strides = array<i32>} : memref<8x32xf32, #tpu.memory_space<vmem>>, vector<8x32xf32>,
    %c0_i32_31 = arith.constant 0 : i32
    %c8_i32_32 = arith.constant 8 : i32
    %23 = arith.addi %c0_i32_31, %c8_i32_32 : i32
    %c1_i32_33 = arith.constant 1 : i32
    scf.for %arg15 = %c0_i32_31 to %23 step %c1_i32_33  : i32 {
      %c1_i32_44 = arith.constant 1 : i32
      %31 = arith.muli %arg15, %c1_i32_44 : i32
      %c0_i32_45 = arith.constant 0 : i32
      %32 = arith.addi %c0_i32_45, %31 : i32
      %c8_i32_46 = arith.constant 8 : i32
      %33 = arith.muli %32, %c8_i32_46 : i32
      %34 = tpu.assume_multiple %33, 8 : i32
      %c0_47 = arith.constant 0 : index
      %c0_48 = arith.constant 0 : index
      %35 = vector.load %arg14[%c0_47, %c0_48] : memref<8x32xf32, #tpu.memory_space<vmem>>, vector<8x32xf32>
      %36 = arith.index_cast %34 : i32 to index
      %c0_49 = arith.constant 0 : index
      %37 = vector.load %arg12[%36, %c0_49] : memref<64x96xf32, #tpu.memory_space<vmem>>, vector<8x96xf32>
      %cst_50 = arith.constant dense<0.000000e+00> : vector<8x96xf32>
      %38 = tpu.matmul %35, %14, %cst_50 {dimension_numbers = #tpu.dot_dimension_numbers<[1], [0], [0], [1], [0, 0, 1, 1], [], []>} : vector<8x32xf32>, vector<32x96xf32>, vector<8x96xf32> -> vector<8x96xf32>
      %39 = vector.broadcast %16 : vector<1x96xf32> to vector<8x96xf32>
      %40 = arith.addf %38, %39 : vector<8x96xf32>
      %41 = vector.extract_strided_slice %37 {offsets = [0, 0], sizes = [8, 32], strides = [1, 1]} : vector<8x96xf32> to vector<8x32xf32>
      %42 = vector.extract_strided_slice %40 {offsets = [0, 0], sizes = [8, 32], strides = [1, 1]} : vector<8x96xf32> to vector<8x32xf32>
      %43 = arith.addf %41, %42 : vector<8x32xf32>
      %44 = arith.negf %43 : vector<8x32xf32>
      %45 = math.exp %44 : vector<8x32xf32>
      %cst_51 = arith.constant 1.000000e+00 : f32
      %46 = vector.broadcast %cst_51 : f32 to vector<8x32xf32>
      %47 = arith.addf %46, %45 : vector<8x32xf32>
      %48 = arith.divf %46, %47 : vector<8x32xf32>
      %49 = vector.extract_strided_slice %37 {offsets = [0, 32], sizes = [8, 32], strides = [1, 1]} : vector<8x96xf32> to vector<8x32xf32>
      %50 = vector.extract_strided_slice %40 {offsets = [0, 32], sizes = [8, 32], strides = [1, 1]} : vector<8x96xf32> to vector<8x32xf32>
      %51 = arith.addf %49, %50 : vector<8x32xf32>
      %52 = arith.negf %51 : vector<8x32xf32>
      %53 = math.exp %52 : vector<8x32xf32>
      %cst_52 = arith.constant 1.000000e+00 : f32
      %54 = vector.broadcast %cst_52 : f32 to vector<8x32xf32>
      %55 = arith.addf %54, %53 : vector<8x32xf32>
      %56 = arith.divf %54, %55 : vector<8x32xf32>
      %57 = vector.extract_strided_slice %37 {offsets = [0, 64], sizes = [8, 32], strides = [1, 1]} : vector<8x96xf32> to vector<8x32xf32>
      %58 = vector.extract_strided_slice %40 {offsets = [0, 64], sizes = [8, 32], strides = [1, 1]} : vector<8x96xf32> to vector<8x32xf32>
      %59 = arith.mulf %48, %58 : vector<8x32xf32>
      %60 = arith.addf %57, %59 : vector<8x32xf32>
      %61 = math.tanh %60 : vector<8x32xf32>
      %cst_53 = arith.constant 1.000000e+00 : f32
      %62 = vector.broadcast %cst_53 : f32 to vector<8x32xf32>
      %63 = arith.subf %62, %56 : vector<8x32xf32>
      %64 = arith.mulf %63, %61 : vector<8x32xf32>
      %65 = arith.mulf %56, %35 : vector<8x32xf32>
      %66 = arith.addf %64, %65 : vector<8x32xf32>
      %c0_54 = arith.constant 0 : index
      %c0_55 = arith.constant 0 : index
      %67 = vector.load %arg14[%c0_54, %c0_55] : memref<8x32xf32, #tpu.memory_space<vmem>>, vector<8x32xf32>
      tpu.vector_store %arg14[%c0_54, %c0_55], %66 {strides = array<i32>} : memref<8x32xf32, #tpu.memory_space<vmem>>, vector<8x32xf32>,
      %68 = arith.index_cast %34 : i32 to index
      %c0_56 = arith.constant 0 : index
      %69 = vector.load %arg13[%68, %c0_56] : memref<64x32xf32, #tpu.memory_space<vmem>>, vector<8x32xf32>
      tpu.vector_store %arg13[%68, %c0_56], %66 {strides = array<i32>} : memref<64x32xf32, #tpu.memory_space<vmem>>, vector<8x32xf32>,
    }
    %c8_i32_34 = arith.constant 8 : i32
    %c0_35 = arith.constant 0 : index
    %c0_36 = arith.constant 0 : index
    %24 = vector.load %arg13[%c0_35, %c0_36] : memref<64x32xf32, #tpu.memory_space<vmem>>, vector<64x32xf32>
    %c0_37 = arith.constant 0 : index
    %c0_38 = arith.constant 0 : index
    %25 = vector.load %arg9[%c0_37, %c0_38] : memref<32x8xf32, #tpu.memory_space<vmem>>, vector<32x8xf32>
    %c0_39 = arith.constant 0 : index
    %c0_40 = arith.constant 0 : index
    %26 = vector.load %arg10[%c0_39, %c0_40] : memref<1x8xf32, #tpu.memory_space<vmem>>, vector<1x8xf32>
    %cst_41 = arith.constant dense<0.000000e+00> : vector<64x8xf32>
    %27 = tpu.matmul %24, %25, %cst_41 {dimension_numbers = #tpu.dot_dimension_numbers<[1], [0], [0], [1], [0, 0, 1, 1], [], []>} : vector<64x32xf32>, vector<32x8xf32>, vector<64x8xf32> -> vector<64x8xf32>
    %28 = vector.broadcast %26 : vector<1x8xf32> to vector<64x8xf32>
    %29 = arith.addf %27, %28 : vector<64x8xf32>
    %c0_42 = arith.constant 0 : index
    %c0_43 = arith.constant 0 : index
    %30 = vector.load %arg11[%c0_42, %c0_43] : memref<64x8xf32, #tpu.memory_space<vmem>>, vector<64x8xf32>
    tpu.vector_store %arg11[%c0_42, %c0_43], %29 {strides = array<i32>} : memref<64x8xf32, #tpu.memory_space<vmem>>, vector<64x8xf32>,
    return
  }
}

</mosaic_0001>

<bundles_post_ra>
// kernel: tpu_custom_call.1
= control target key start
LH: loop header
LB: loop body
LE: loop exit
PB: predicated region body
PF: predicated region fallthrough
CT: control target
= control target key end

     0   :  { %vm60_vm0 = vcmask 130048   ;;  %vm199_vm1 = vcmask 261120   ;;  %v1048_v16 = vmov 0.0   ;;  %vm190_vm2 = vcmask 785408   ;;  %s1344_s1 = inlined_call_operand.vmem [shape: f32[16,96], index: 1, kind: input, shape index: {}]   ;;  %s1345_s2 = inlined_call_operand.vmem [shape: f32[32,96], index: 2, kind: input, shape index: {}]   ;;  %s1346_s4 = inlined_call_operand.vmem [shape: f32[1,96], index: 4, kind: input, shape index: {}]   ;;  %s1347_s5 = inlined_call_operand.vmem [shape: f32[32,96], index: 5, kind: input, shape index: {}]   ;;  %s1348_s6 = inlined_call_operand.vmem [shape: f32[32,96], index: 6, kind: input, shape index: {}]   ;;  %s1349_s7 = inlined_call_operand.vmem [shape: f32[1,96], index: 7, kind: input, shape index: {}]   ;;  %s1350_s8 = inlined_call_operand.vmem [shape: f32[1,96], index: 8, kind: input, shape index: {}]   ;;  %s1351_s9 = inlined_call_operand.vmem [shape: f32[32,8], index: 9, kind: input, shape index: {}]   ;;  %s1352_s10 = inlined_call_operand.vmem [shape: f32[1,8], index: 10, kind: input, shape index: {}]   ;;  %s1353_s11 = inlined_call_operand.vmem [shape: f32[64,8], index: 11, kind: output, shape index: {}]   ;;  %s1354_s0 = inlined_call_operand.vmem [shape: f32[64,16], index: 0, kind: input, shape index: {}]   ;;  %s1355_s3 = inlined_call_operand.vmem [shape: f32[1,96], index: 3, kind: input, shape index: {}]  }
   0x1   :  { %v46_v0 = vld [vmem:[%s1344_s1] sm:$0xff]  ;;  %v47_v1 = vld [vmem:[%s1344_s1 + $0x8] sm:$0xff]  ;;  %v1140_v4 = vld [vmem:[%s1345_s2 + $0x10] sm:$0xff]  ;;  %200 = vst.msk [vmem:[#allocation4] sm:$0xff] %vm199_vm1, %v1048_v16 }
   0x2   :  { %v1130_v2 = vld [vmem:[%s1345_s2] sm:$0xff]  ;;  %v1135_v3 = vld [vmem:[%s1345_s2 + $0x8] sm:$0xff]  ;;  %v1145_v5 = vld [vmem:[%s1345_s2 + $0x18] sm:$0xff]  ;;  %v949_v6 = vpack.c.bf16 %v47_v1, %v46_v0 }
   0x3   :  { %v1150_v7 = vld [vmem:[%s1346_s4] ss:$0 sm:$0xff]  ;;  %v39_v10 = vld [vmem:[%s1354_s0 + $0x8] sm:$0xff]  ;;  %v40_v12 = vld [vmem:[%s1354_s0 + $0x10] sm:$0xff] }
   0x4   :  { %v38_v8 = vld [vmem:[%s1354_s0] sm:$0xff]  ;;  %950 = vmatprep.subr.bf16.mxu0 %v949_v6  ;;  %981 = vmatprep.subr.bf16.mxu1 %v949_v6  ;;  %v43_v11 = vld [vmem:[%s1354_s0 + $0x28] sm:$0xff]  ;;  %v44_v13 = vld [vmem:[%s1354_s0 + $0x30] sm:$0xff] }
   0x5   :  { %v42_v9 = vld [vmem:[%s1354_s0 + $0x20] sm:$0xff]  ;;  %952 = vmatpush3.bf16.msra.mxu0 %v949_v6  ;;  %982 = vmatpush3.bf16.msra.mxu1 %v949_v6  ;;  %v41_v14 = vld [vmem:[%s1354_s0 + $0x18] sm:$0xff] }
   0x6   :  { %875 = vmatprep.mubr.msk.f32.mxu0 %vm60_vm0, %v38_v8  ;;  %881 = vmatprep.mubr.msk.f32.mxu1 %vm60_vm0, %v42_v9  ;;  %v45_v15 = vld [vmem:[%s1354_s0 + $0x38] sm:$0xff]  ;;  %v792_v17 = vld [vmem:[%s1355_s3] ss:$0 sm:$0xff]  ;;  %s1197_s0 = smov 0  }
   0x8   :  { %876 = vmatmul.mubr.msk.f32.vlgmr.msra.gmra.mrb[0].mxu0 %vm60_vm0, %v39_v10  ;;  %882 = vmatmul.mubr.msk.f32.vlgmr.msra.gmra.mrb[0].mxu1 %vm60_vm0, %v43_v11 }
   0x9   :  { %878 = vmatprep.mubr.msk.f32.mxu0 %vm60_vm0, %v40_v12  ;;  %884 = vmatprep.mubr.msk.f32.mxu1 %vm60_vm0, %v44_v13 }
   0xc   :  { %879 = vmatmul.mubr.msk.f32.gmra.mrb[2].mxu0 %vm60_vm0, %v41_v14  ;;  %885 = vmatmul.mubr.msk.f32.gmra.mrb[2].mxu1 %vm60_vm0, %v45_v15 }
  0xdb   :  { %v877_v18 = vpop.f32.mrb[0].mxu0  ;;  %v883_v19 = vpop.f32.mrb[0].mxu1 }
  0xdc   :  { %v157_v20 = vadd.f32 %v877_v18, %v792_v17  ;;  %v177_v21 = vadd.f32 %v883_v19, %v792_v17  ;;  %v151_v22 = vpop.f32.mrb[1].mxu0  ;;  %v171_v23 = vpop.f32.mrb[1].mxu1 }
  0xdd   :  { %v152_v24 = vadd.f32 %v792_v17, %v151_v22  ;;  %v172_v25 = vadd.f32 %v792_v17, %v171_v23 }
  0xde   :  { %192 = vst.msk [vmem:[#allocation2 + $0x8] sm:$0xff] %vm190_vm2, %v157_v20  ;;  %196 = vst.msk [vmem:[#allocation2 + $0x28] sm:$0xff] %vm190_vm2, %v177_v21 }
  0xdf   :  { %191 = vst.msk [vmem:[#allocation2] sm:$0xff] %vm190_vm2, %v152_v24  ;;  %195 = vst.msk [vmem:[#allocation2 + $0x20] sm:$0xff] %vm190_vm2, %v172_v25  ;;  %v880_v26 = vpop.f32.mrb[2].mxu0  ;;  %v886_v27 = vpop.f32.mrb[2].mxu1 }
  0xe0   :  { %v167_v28 = vadd.f32 %v880_v26, %v792_v17  ;;  %v187_v29 = vadd.f32 %v886_v27, %v792_v17  ;;  %v161_v30 = vpop.f32.mrb[3].mxu0  ;;  %v181_v31 = vpop.f32.mrb[3].mxu1 }
  0xe1   :  { %v162_v32 = vadd.f32 %v792_v17, %v161_v30  ;;  %v182_v33 = vadd.f32 %v792_v17, %v181_v31 }
  0xe2   :  { %194 = vst.msk [vmem:[#allocation2 + $0x18] sm:$0xff] %vm190_vm2, %v167_v28  ;;  %198 = vst.msk [vmem:[#allocation2 + $0x38] sm:$0xff] %vm190_vm2, %v187_v29 }
  0xe3   :  { %193 = vst.msk [vmem:[#allocation2 + $0x10] sm:$0xff] %vm190_vm2, %v162_v32  ;;  %197 = vst.msk [vmem:[#allocation2 + $0x30] sm:$0xff] %vm190_vm2, %v182_v33 }
  0xe4 LB: > { %v954_v34 = vpack.c.bf16 %v1135_v3, %v1130_v2  ;;  %v1049_v35 = vmov 0.0|0.0   ;;  %v957_v36 = vpack.c.bf16 %v1145_v5, %v1140_v4  ;;  %vm1050_vm3 = vmmov 0   ;;  %v208_v38 = vld [vmem:[#allocation4] sm:$0xff]  ;;  %s1052_s3 = smov 64   ;;  %s801_s27 = sshll.u32 %s1042_s0, 3  ;;  %s1042_s0 = sphi %s1197_s0, %s206_s0  }
  0xe5   : > { %953 = vmatprep.subr.bf16.mxu0 %v1049_v35  ;;  %v1051_v37 = vmov 0.0   ;;  %s209_s28 = scalar_lea.vmem [#allocation2], %s801_s27  ;;  %s1053_s1 = smov 96  }
  0xe6   : > { %955 = vmatpush3.bf16.msra.mxu0 %v954_v34  ;;  %895 = vmatprep.mubr.msk.f32.mxu0 %vm1050_vm3, %v1051_v37  ;;  %s1054_s29 = smov 32   ;;  %s324_s30 = scalar_lea.vmem [#allocation3], %s801_s27 }
  0xe7   : > { %956 = vmatprep.subr.bf16.mxu0 %v1049_v35  ;;  %s206_s0 = sadd.s32 1, %s1042_s0  }
  0xe8   : > { %p203_p0 = scmp.ge.s32.totalorder %s206_s0, 8  }
  0xe9   :  { %v334_v60 = vld [vmem:[%s1347_s5] sm:$0xff] (%p203_p0)  ;;  %v335_v61 = vld [vmem:[%s1347_s5 + $0x8] sm:$0xff] (%p203_p0)  ;;  %v1235_v0 = vld [vmem:[%s1348_s6 + $0x10] sm:$0xff] (%p203_p0) }
  0xea   : > { %958 = vmatpush3.bf16.msra.mxu0 %v957_v36  ;;  %v210_v42 = vld [vmem:[%s209_s28] sm:$0xff]  ;;  %v1230_v63 = vld [vmem:[%s1348_s6 + $0x8] sm:$0xff] (%p203_p0)  ;;  %v1240_v1 = vld [vmem:[%s1348_s6 + $0x18] sm:$0xff] (%p203_p0)  ;;  %v959_v2 = vpack.c.bf16 (%p203_p0), %v335_v61, %v334_v60 }
  0xeb   :  { %v1223_v62 = vld [vmem:[%s1348_s6] sm:$0xff] (%p203_p0)  ;;  %v336_v4 = vld [vmem:[%s1347_s5 + $0x10] sm:$0xff] (%p203_p0)  ;;  %v337_v5 = vld [vmem:[%s1347_s5 + $0x18] sm:$0xff] (%p203_p0) }
  0xec   :  { %v1245_v3 = vld [vmem:[%s1350_s8] ss:$0 sm:$0xff] (%p203_p0)  ;;  %960 = vmatprep.subr.bf16.mxu0 (%p203_p0), %v959_v2  ;;  %983 = vmatprep.subr.bf16.mxu1 (%p203_p0), %v959_v2  ;;  %v963_v6 = vpack.c.bf16 (%p203_p0), %v337_v5, %v336_v4 }
  0xed   : > { %896 = vmatmul.mubr.msk.f32.vlgmr.msra.gmra.mrb[0].mxu0 %vm199_vm1, %v208_v38  ;;  %985 = vmatpush3.bf16.msra.mxu1 (%p203_p0), %v959_v2  ;;  %v805_v15 = vld [vmem:[%s1349_s7] ss:$0 sm:$0xff] (%p203_p0)  ;;  %s1272_s7 = smov (%p203_p0), 0  }
  0xee   :  { %962 = vmatpush3.bf16.msra.mxu0 (%p203_p0), %v959_v2  ;;  %984 = vmatprep.subr.bf16.mxu1 (%p203_p0), %v963_v6 }
  0xef   :  { %964 = vmatprep.subr.bf16.mxu0 (%p203_p0), %v963_v6 }
  0xf1   :  { %986 = vmatpush3.bf16.msra.mxu1 (%p203_p0), %v963_v6 }
  0xf2   :  { %966 = vmatpush3.bf16.msra.mxu0 (%p203_p0), %v963_v6 }
 0x1c0   : > { %v286_v39 = vpop.f32.mrb[0].mxu0 }
 0x1c1   : > { %v287_v40 = vadd.f32 %v1150_v7, %v286_v39  ;;  %v897_v41 = vpop.f32.mrb[1].mxu0 }
 0x1c3   : > { %298 = vrot.lane.b32.xlu0 %v287_v40, %s1052_s3  ;;  %v290_v43 = vadd.f32 %v287_v40, %v210_v42 }
 0x1c5   : > { %v804_v44 = vmul.f32 -1.442695, %v290_v43 }
 0x1c7   : > { %1020 = vpow2.f32 %v804_v44 }
 0x1d1   : > { %v1021_v45 = vpop.eup %1020 }
 0x1d2   : > { %v294_v46 = vadd.f32 1.0, %v1021_v45 }
 0x1d4   : > { %1022 = vrcp.f32 %v294_v46 }
 0x1de   : > { %v1023_v47 = vpop.eup %1022 }
 0x1df   : > { %v308_v54 = vsub.f32 1.0, %v1023_v47 }
 0x235   : > { %v299_v48 = vpop.permute.xlu0 %298 }
 0x236   : > { %v301_v49 = vmul.f32 %v1023_v47, %v299_v48 }
 0x238   : > { %303 = vrot.lane.b32.xlu0 %v301_v49, %s1052_s3 }
 0x2aa   : > { %v304_v50 = vpop.permute.xlu0 %303 }
 0x2ab   : > { %v306_v51 = vadd.f32 %v304_v50, %v210_v42 }
 0x2ad   : > { %1024 = vtanh.f32 %v306_v51 }
 0x2b7   : > { %v1025_v52 = vpop.eup %1024 }
 0x2b8   : > { %310 = vrot.lane.b32.xlu1 %v1025_v52, %s1053_s1 }
 0x2bc   : > { %314 = vrot.lane.b32.xlu1 %v208_v38, %s1054_s29 }
 0x32a   : > { %v311_v53 = vpop.permute.xlu1 %310 }
 0x32b   : > { %v313_v56 = vmul.f32 %v311_v53, %v308_v54 }
 0x32e   : > { %v315_v55 = vpop.permute.xlu1 %314 }
 0x32f   : > { %v317_v57 = vmul.f32 %v1023_v47, %v315_v55 }
 0x331   : > { %v318_v58 = vadd.f32 %v317_v57, %v313_v56 }
 0x333   : > { %320 = vrot.lane.b32.xlu0 %v318_v58, %s1053_s1 }
 0x3a0   :  { %205 = sbr.rel (!%p203_p0) target bundleno = 228 (0xe4), region = 82 }
 0x3a5   : > { %v321_v59 = vpop.permute.xlu0 %320 }
 0x3a6   : > { %323 = vst.msk [vmem:[#allocation4] sm:$0xff] %vm199_vm1, %v321_v59  ;;  %325 = vst.msk [vmem:[%s324_s30] sm:$0xff] %vm199_vm1, %v321_v59 }
 0x3a7   :  { %487 = vst.msk [vmem:[#allocation4] sm:$0xff] %vm199_vm1, %v1048_v16 }
 0x3ad   :  { %v326_v7 = vld [vmem:[#allocation3] sm:$0xff]  ;;  %v327_v9 = vld [vmem:[#allocation3 + $0x8] sm:$0xff]  ;;  %v328_v11 = vld [vmem:[#allocation3 + $0x10] sm:$0xff] }
 0x3ae   :  { %v330_v8 = vld [vmem:[#allocation3 + $0x20] sm:$0xff]  ;;  %906 = vmatprep.mubr.msk.f32.mxu0 %vm199_vm1, %v326_v7  ;;  %v331_v10 = vld [vmem:[#allocation3 + $0x28] sm:$0xff]  ;;  %v332_v12 = vld [vmem:[#allocation3 + $0x30] sm:$0xff] }
 0x3af   :  { %912 = vmatprep.mubr.msk.f32.mxu1 %vm199_vm1, %v330_v8  ;;  %907 = vmatmul.mubr.msk.f32.vlgmr.msra.gmra.mrb[0].mxu0 %vm199_vm1, %v327_v9  ;;  %v329_v13 = vld [vmem:[#allocation3 + $0x18] sm:$0xff] }
 0x3b0   :  { %913 = vmatmul.mubr.msk.f32.vlgmr.msra.gmra.mrb[0].mxu1 %vm199_vm1, %v331_v10  ;;  %909 = vmatprep.mubr.msk.f32.mxu0 %vm199_vm1, %v328_v11  ;;  %v333_v14 = vld [vmem:[#allocation3 + $0x38] sm:$0xff] }
 0x3b1   :  { %915 = vmatprep.mubr.msk.f32.mxu1 %vm199_vm1, %v332_v12 }
 0x3b3   :  { %910 = vmatmul.mubr.msk.f32.gmra.mrb[2].mxu0 %vm199_vm1, %v329_v13 }
 0x3b4   :  { %916 = vmatmul.mubr.msk.f32.gmra.mrb[2].mxu1 %vm199_vm1, %v333_v14 }
 0x482   :  { %v908_v16 = vpop.f32.mrb[0].mxu0 }
 0x483   :  { %v914_v17 = vpop.f32.mrb[0].mxu1  ;;  %v446_v18 = vadd.f32 %v908_v16, %v805_v15  ;;  %v440_v20 = vpop.f32.mrb[1].mxu0 }
 0x484   :  { %v466_v19 = vadd.f32 %v914_v17, %v805_v15  ;;  %v460_v21 = vpop.f32.mrb[1].mxu1  ;;  %v441_v22 = vadd.f32 %v805_v15, %v440_v20 }
 0x485   :  { %v461_v23 = vadd.f32 %v805_v15, %v460_v21  ;;  %480 = vst.msk [vmem:[#allocation2 + $0x8] sm:$0xff] %vm190_vm2, %v446_v18 }
 0x486   :  { %484 = vst.msk [vmem:[#allocation2 + $0x28] sm:$0xff] %vm190_vm2, %v466_v19  ;;  %479 = vst.msk [vmem:[#allocation2] sm:$0xff] %vm190_vm2, %v441_v22  ;;  %v911_v24 = vpop.f32.mrb[2].mxu0 }
 0x487   :  { %483 = vst.msk [vmem:[#allocation2 + $0x20] sm:$0xff] %vm190_vm2, %v461_v23  ;;  %v917_v25 = vpop.f32.mrb[2].mxu1  ;;  %v456_v26 = vadd.f32 %v911_v24, %v805_v15  ;;  %v450_v28 = vpop.f32.mrb[3].mxu0 }
 0x488   :  { %v476_v27 = vadd.f32 %v917_v25, %v805_v15  ;;  %v470_v29 = vpop.f32.mrb[3].mxu1  ;;  %v451_v30 = vadd.f32 %v805_v15, %v450_v28 }
 0x489   :  { %v471_v31 = vadd.f32 %v805_v15, %v470_v29  ;;  %482 = vst.msk [vmem:[#allocation2 + $0x18] sm:$0xff] %vm190_vm2, %v456_v26 }
 0x48a   :  { %486 = vst.msk [vmem:[#allocation2 + $0x38] sm:$0xff] %vm190_vm2, %v476_v27  ;;  %481 = vst.msk [vmem:[#allocation2 + $0x10] sm:$0xff] %vm190_vm2, %v451_v30 }
 0x48b   :  { %485 = vst.msk [vmem:[#allocation2 + $0x30] sm:$0xff] %vm190_vm2, %v471_v31 }
 0x48c LB: > { %v968_v32 = vpack.c.bf16 %v1230_v63, %v1223_v62  ;;  %v1055_v33 = vmov 0.0|0.0   ;;  %v971_v34 = vpack.c.bf16 %v1240_v1, %v1235_v0  ;;  %vm1056_vm4 = vmmov 0   ;;  %v495_v36 = vld [vmem:[#allocation4] sm:$0xff]  ;;  %s1058_s8 = smov 64   ;;  %s814_s3 = sshll.u32 %s1046_s7, 3  ;;  %s1046_s7 = sphi %s1272_s7, %s493_s7  }
 0x48d   : > { %967 = vmatprep.subr.bf16.mxu0 %v1055_v33  ;;  %v1057_v35 = vmov 0.0   ;;  %s496_s27 = scalar_lea.vmem [#allocation2], %s814_s3  ;;  %s1059_s28 = smov 96  }
 0x48e   : > { %969 = vmatpush3.bf16.msra.mxu0 %v968_v32  ;;  %926 = vmatprep.mubr.msk.f32.mxu0 %vm1056_vm4, %v1057_v35  ;;  %s1060_s1 = smov 32   ;;  %s611_s29 = scalar_lea.vmem [#allocation3], %s814_s3 }
 0x48f   : > { %970 = vmatprep.subr.bf16.mxu0 %v1055_v33  ;;  %s493_s7 = sadd.s32 1, %s1046_s7  }
 0x490   : > { %p490_p1 = scmp.ge.s32.totalorder %s493_s7, 8  }
 0x491   :  { %v621_v58 = vld [vmem:[%s1351_s9] sm:$0xff] (%p490_p1)  ;;  %v622_v59 = vld [vmem:[%s1351_s9 + $0x8] sm:$0xff] (%p490_p1)  ;;  %v623_v60 = vld [vmem:[%s1351_s9 + $0x10] sm:$0xff] (%p490_p1)  ;;  %vm761_vm5 = vcmask (%p490_p1), 64512  }
 0x492   : > { %972 = vmatpush3.bf16.msra.mxu0 %v971_v34  ;;  %v497_v40 = vld [vmem:[%s496_s27] sm:$0xff]  ;;  %v973_v61 = vpack.c.bf16 (%p490_p1), %v622_v59, %v621_v58  ;;  %v624_v2 = vld [vmem:[%s1351_s9 + $0x18] sm:$0xff] (%p490_p1) }
 0x493   :  { %v977_v6 = vpack.c.bf16 (%p490_p1), %v624_v2, %v623_v60  ;;  %v818_v8 = vld [vmem:[%s1352_s10] ss:$0 sm:$0xff] (%p490_p1) }
 0x494   :  { %974 = vmatprep.subr.bf16.mxu0 (%p490_p1), %v973_v61  ;;  %987 = vmatprep.subr.bf16.mxu1 (%p490_p1), %v973_v61 }
 0x495   : > { %927 = vmatmul.mubr.msk.f32.vlgmr.msra.gmra.mrb[0].mxu0 %vm199_vm1, %v495_v36  ;;  %989 = vmatpush3.bf16.msra.mxu1 (%p490_p1), %v973_v61 }
 0x496   :  { %976 = vmatpush3.bf16.msra.mxu0 (%p490_p1), %v973_v61  ;;  %988 = vmatprep.subr.bf16.mxu1 (%p490_p1), %v977_v6 }
 0x497   :  { %978 = vmatprep.subr.bf16.mxu0 (%p490_p1), %v977_v6 }
 0x499   :  { %990 = vmatpush3.bf16.msra.mxu1 (%p490_p1), %v977_v6 }
 0x49a   :  { %980 = vmatpush3.bf16.msra.mxu0 (%p490_p1), %v977_v6 }
 0x568   : > { %v573_v37 = vpop.f32.mrb[0].mxu0 }
 0x569   : > { %v574_v38 = vadd.f32 %v1245_v3, %v573_v37  ;;  %v928_v39 = vpop.f32.mrb[1].mxu0 }
 0x56b   : > { %585 = vrot.lane.b32.xlu0 %v574_v38, %s1058_s8  ;;  %v577_v41 = vadd.f32 %v574_v38, %v497_v40 }
 0x56d   : > { %v817_v42 = vmul.f32 -1.442695, %v577_v41 }
 0x56f   : > { %1026 = vpow2.f32 %v817_v42 }
 0x579   : > { %v1027_v43 = vpop.eup %1026 }
 0x57a   : > { %v581_v44 = vadd.f32 1.0, %v1027_v43 }
 0x57c   : > { %1028 = vrcp.f32 %v581_v44 }
 0x586   : > { %v1029_v45 = vpop.eup %1028 }
 0x587   : > { %v595_v52 = vsub.f32 1.0, %v1029_v45 }
 0x5dd   : > { %v586_v46 = vpop.permute.xlu0 %585 }
 0x5de   : > { %v588_v47 = vmul.f32 %v1029_v45, %v586_v46 }
 0x5e0   : > { %590 = vrot.lane.b32.xlu0 %v588_v47, %s1058_s8 }
 0x652   : > { %v591_v48 = vpop.permute.xlu0 %590 }
 0x653   : > { %v593_v49 = vadd.f32 %v591_v48, %v497_v40 }
 0x655   : > { %1030 = vtanh.f32 %v593_v49 }
 0x65f   : > { %v1031_v50 = vpop.eup %1030 }
 0x660   : > { %597 = vrot.lane.b32.xlu1 %v1031_v50, %s1059_s28 }
 0x664   : > { %601 = vrot.lane.b32.xlu1 %v495_v36, %s1060_s1 }
 0x6d2   : > { %v598_v51 = vpop.permute.xlu1 %597 }
 0x6d3   : > { %v600_v54 = vmul.f32 %v598_v51, %v595_v52 }
 0x6d6   : > { %v602_v53 = vpop.permute.xlu1 %601 }
 0x6d7   : > { %v604_v55 = vmul.f32 %v1029_v45, %v602_v53 }
 0x6d9   : > { %v605_v56 = vadd.f32 %v604_v55, %v600_v54 }
 0x6db   : > { %607 = vrot.lane.b32.xlu0 %v605_v56, %s1059_s28 }
 0x748   :  { %492 = sbr.rel (!%p490_p1) target bundleno = 1164 (0x48c), region = 93 }
 0x74d   : > { %v608_v57 = vpop.permute.xlu0 %607 }
 0x74e   : > { %610 = vst.msk [vmem:[#allocation4] sm:$0xff] %vm199_vm1, %v608_v57  ;;  %612 = vst.msk [vmem:[%s611_s29] sm:$0xff] %vm199_vm1, %v608_v57 }
 0x755   :  { %v613_v4 = vld [vmem:[#allocation3] sm:$0xff]  ;;  %v614_v62 = vld [vmem:[#allocation3 + $0x8] sm:$0xff]  ;;  %v615_v0 = vld [vmem:[#allocation3 + $0x10] sm:$0xff] }
 0x756   :  { %v617_v5 = vld [vmem:[#allocation3 + $0x20] sm:$0xff]  ;;  %937 = vmatprep.mubr.msk.f32.mxu0 %vm199_vm1, %v613_v4  ;;  %v618_v63 = vld [vmem:[#allocation3 + $0x28] sm:$0xff]  ;;  %v619_v1 = vld [vmem:[#allocation3 + $0x30] sm:$0xff] }
 0x757   :  { %943 = vmatprep.mubr.msk.f32.mxu1 %vm199_vm1, %v617_v5  ;;  %938 = vmatmul.mubr.msk.f32.vlgmr.msra.gmra.mrb[0].mxu0 %vm199_vm1, %v614_v62  ;;  %v616_v3 = vld [vmem:[#allocation3 + $0x18] sm:$0xff] }
 0x758   :  { %944 = vmatmul.mubr.msk.f32.vlgmr.msra.gmra.mrb[0].mxu1 %vm199_vm1, %v618_v63  ;;  %940 = vmatprep.mubr.msk.f32.mxu0 %vm199_vm1, %v615_v0  ;;  %v620_v7 = vld [vmem:[#allocation3 + $0x38] sm:$0xff] }
 0x759   :  { %946 = vmatprep.mubr.msk.f32.mxu1 %vm199_vm1, %v619_v1 }
 0x75b   :  { %941 = vmatmul.mubr.msk.f32.gmra.mrb[2].mxu0 %vm199_vm1, %v616_v3 }
 0x75c   :  { %947 = vmatmul.mubr.msk.f32.gmra.mrb[2].mxu1 %vm199_vm1, %v620_v7 }
 0x82a   :  { %v939_v9 = vpop.f32.mrb[0].mxu0 }
 0x82b   :  { %v945_v10 = vpop.f32.mrb[0].mxu1  ;;  %v728_v11 = vadd.f32 %v939_v9, %v818_v8  ;;  %v722_v13 = vpop.f32.mrb[1].mxu0 }
 0x82c   :  { %v748_v12 = vadd.f32 %v945_v10, %v818_v8  ;;  %v742_v14 = vpop.f32.mrb[1].mxu1  ;;  %v723_v15 = vadd.f32 %v818_v8, %v722_v13 }
 0x82d   :  { %v743_v16 = vadd.f32 %v818_v8, %v742_v14  ;;  %763 = vst.msk [vmem:[%s1353_s11 + $0x8] sm:$0xff] %vm761_vm5, %v728_v11 }
 0x82e   :  { %767 = vst.msk [vmem:[%s1353_s11 + $0x28] sm:$0xff] %vm761_vm5, %v748_v12  ;;  %762 = vst.msk [vmem:[%s1353_s11] sm:$0xff] %vm761_vm5, %v723_v15  ;;  %v942_v17 = vpop.f32.mrb[2].mxu0 }
 0x82f   :  { %766 = vst.msk [vmem:[%s1353_s11 + $0x20] sm:$0xff] %vm761_vm5, %v743_v16  ;;  %v948_v18 = vpop.f32.mrb[2].mxu1  ;;  %v738_v19 = vadd.f32 %v942_v17, %v818_v8  ;;  %v732_v21 = vpop.f32.mrb[3].mxu0 }
 0x830   :  { %v758_v20 = vadd.f32 %v948_v18, %v818_v8  ;;  %v752_v22 = vpop.f32.mrb[3].mxu1  ;;  %v733_v23 = vadd.f32 %v818_v8, %v732_v21 }
 0x831   :  { %v753_v24 = vadd.f32 %v818_v8, %v752_v22  ;;  %765 = vst.msk [vmem:[%s1353_s11 + $0x18] sm:$0xff] %vm761_vm5, %v738_v19 }
 0x832   :  { %769 = vst.msk [vmem:[%s1353_s11 + $0x38] sm:$0xff] %vm761_vm5, %v758_v20  ;;  %764 = vst.msk [vmem:[%s1353_s11 + $0x10] sm:$0xff] %vm761_vm5, %v733_v23 }
 0x833   :  { %768 = vst.msk [vmem:[%s1353_s11 + $0x30] sm:$0xff] %vm761_vm5, %v753_v24 }

</bundles_post_ra>
